<compile_context>
chip_gen: v7x
topology: tpu7x:2x2x1
jax: 0.10.0
libtpu: 0.0.40
codegen_flags: <defaults>
</compile_context>

<pallas_src>
import jax
import jax.numpy as jnp
from jax.experimental import pallas as pl
from jax.experimental.pallas import tpu as pltpu


def _round_up(a, b):
    return (a + b - 1) // b * b


def _pad_2d(a, rows, cols):
    return jnp.pad(a, ((0, rows - a.shape[0]), (0, cols - a.shape[1])))


def _vmem_capacity_bytes():
    try:
        info = pltpu.get_tpu_info()
        return int(getattr(info, "vmem_capacity_bytes", 64 * 1024 * 1024))
    except Exception:
        return 64 * 1024 * 1024


def _choose_tm(M, tm_max):
    """Balanced row tiles (waste < 16 rows/tile), multiple of 16 (bf16 sublane
    packing), and >=2 grid steps when possible so both v7x TensorCores engage."""
    n_tiles = pl.cdiv(M, tm_max)
    if M > 16:
        n_tiles = max(n_tiles, 2)
    tm = _round_up(pl.cdiv(M, n_tiles), 16)
    return max(16, min(tm, _round_up(tm_max, 16)))


# ---------------------------------------------------------------------------
# Fused kernel:
#   x_ref:   (tm, K)        bf16  row tile of patchified activations (pipelined)
#   bbw_ref: (K, F_pad)     bf16  backbone conv weight (resident)
#   bbb_ref: (1, F_pad)     f32   backbone bias
#   pw_ref:  (F_pad, E_pad) bf16  proj (1x1 conv) weight (resident)
#   pb_ref:  (1, E_pad)     f32   proj bias
#   o_ref:   (tm, E_pad)    bf16  lane-dense output tile
# ---------------------------------------------------------------------------
def _hybrid_embed_kernel(x_ref, bbw_ref, bbb_ref, pw_ref, pb_ref, o_ref):
    feats = jnp.dot(x_ref[...], bbw_ref[...], preferred_element_type=jnp.float32)
    feats = jnp.maximum(feats + bbb_ref[...], 0.0)                 # backbone ReLU
    out = jnp.dot(feats.astype(jnp.bfloat16), pw_ref[...],
                  preferred_element_type=jnp.float32)              # proj 1x1 conv
    o_ref[...] = (out + pb_ref[...]).astype(o_ref.dtype)           # bf16 store


def _make_embed_call(M, K, F_pad, E_pad, tm, vmem_limit, *, single_buffer_weights):
    # Constant index_map => weights stay resident; Buffered(1) avoids wasting a
    # second VMEM buffer on them (matters for real feature_dim/embed_dim on v7x).
    resident = dict(pipeline_mode=pl.Buffered(1)) if single_buffer_weights else {}
    return pl.pallas_call(
        _hybrid_embed_kernel,
        out_shape=jax.ShapeDtypeStruct((M, E_pad), jnp.bfloat16),
        grid_spec=pltpu.PrefetchScalarGridSpec(
            num_scalar_prefetch=0,
            grid=(pl.cdiv(M, tm),),                       # ragged last block is OK
            in_specs=[
                pl.BlockSpec((tm, K), lambda i: (i, 0)),              # activations
                pl.BlockSpec((K, F_pad), lambda i: (0, 0), **resident),
                pl.BlockSpec((1, F_pad), lambda i: (0, 0), **resident),
                pl.BlockSpec((F_pad, E_pad), lambda i: (0, 0), **resident),
                pl.BlockSpec((1, E_pad), lambda i: (0, 0), **resident),
            ],
            out_specs=pl.BlockSpec((tm, E_pad), lambda i: (i, 0)),
        ),
        compiler_params=pltpu.CompilerParams(
            dimension_semantics=("parallel",),            # rows shard across TCs
            vmem_limit_bytes=vmem_limit,                  # per-generation budget
        ),
    )


def fused_embed(x2d, bb_w, bb_b, proj_w, proj_b):
    """x2d: (M, K) patch rows -> (M, E) bf16, via one fused Pallas kernel."""
    M, K = x2d.shape
    Kw, F = bb_w.shape
    Fw, E = proj_w.shape
    assert K == Kw and F == Fw and bb_b.shape == (1, F) and proj_b.shape == (1, E)

    cap = _vmem_capacity_bytes()
    vmem_limit = cap * 3 // 4              # 48 MiB on v7x (64), 96 MiB on v5e/v6e (128)
    tm_max = 512 if cap >= (96 << 20) else 256
    tm = _choose_tm(M, tm_max)

    # Only the tiny weights/biases are padded/copied on the host; the activation
    # tensor is passed through untouched (K handled via a full-extent block).
    F_pad = _round_up(F, 128)
    E_pad = _round_up(E, 128)
    x_b = x2d if x2d.dtype == jnp.bfloat16 else x2d.astype(jnp.bfloat16)
    bbw_p = _pad_2d(bb_w, K, F_pad).astype(jnp.bfloat16)
    bbb_p = _pad_2d(bb_b, 1, F_pad).astype(jnp.float32)
    pw_p = _pad_2d(proj_w, F_pad, E_pad).astype(jnp.bfloat16)
    pb_p = _pad_2d(proj_b, 1, E_pad).astype(jnp.float32)

    args = (x_b, bbw_p, bbb_p, pw_p, pb_p)
    try:
        out = _make_embed_call(M, K, F_pad, E_pad, tm, vmem_limit,
                               single_buffer_weights=True)(*args)
    except Exception:
        # TODO(synk): pl.Buffered(1) not accepted by this jax/Mosaic version;
        # fall back to default double-buffering of the resident weights.
        out = _make_embed_call(M, K, F_pad, E_pad, tm, vmem_limit,
                               single_buffer_weights=False)(*args)

    if E_pad != E:
        # TODO(synk): lane-dim slice forces an extra output copy; prefer
        # embed_dim % 128 == 0 (standard ViT dims) or consume the padded E.
        out = out[:, :E]
    return out                                            # (M, E) bf16


# ---------------------------------------------------------------------------
# HybridEmbed forward
# ---------------------------------------------------------------------------
def hybrid_embed_forward(x_nchw, params, *, patch=4):
    """x_nchw: (B, C, H, W) float32 -> (B, num_patches, embed_dim) bfloat16."""
    B, C, H, W = x_nchw.shape
    Hf, Wf = H // patch, W // patch

    # Single fused patchify pass: one 6-D transpose with the bf16 convert fused
    # into it (was: two transposes + a separate pad/astype copy of x).
    x = x_nchw.reshape(B, C, Hf, patch, Wf, patch)
    x = jnp.transpose(x, (0, 2, 4, 3, 5, 1)).astype(jnp.bfloat16)  # (B,Hf,Wf,p,p,C)
    x2d = x.reshape(B * Hf * Wf, patch * patch * C)                # (M, K), K=(ph,pw,c)

    out = fused_embed(x2d, params["bb_w"], params["bb_b"],
                      params["proj_w"], params["proj_b"])          # (M, E) bf16

    embed_dim = params["proj_w"].shape[1]
    return out.reshape(B, Hf * Wf, embed_dim)                      # (B, N, E)


# ---------------------------------------------------------------------------
# Deterministic parameter init (shapes follow the module's __init__).
# For a real conv weight, permute its K axis (tiny tensor) on the host to match
# the activations' (ph, pw, c) order — the synthetic weight is generated in that
# order directly.
# ---------------------------------------------------------------------------
def init_params(key, *, in_chans, patch, feature_dim, embed_dim):
    k1, k2, k3, k4 = jax.random.split(key, 4)
    kk = patch * patch * in_chans
    return {
        # backbone conv: Conv2d(in_chans, feature_dim, kernel_size=4, stride=4)
        "bb_w": jax.random.normal(k1, (kk, feature_dim), jnp.float32) * 0.05,
        "bb_b": jax.random.normal(k2, (1, feature_dim), jnp.float32) * 0.05,
        # self.proj = nn.Conv2d(feature_dim, embed_dim, 1)
        "proj_w": jax.random.normal(k3, (feature_dim, embed_dim), jnp.float32) * 0.05,
        "proj_b": jax.random.normal(k4, (1, embed_dim), jnp.float32) * 0.05,
    }


if __name__ == "__main__":
    B, C, H, W = 2, 3, 16, 16       # small NCHW input, like the PyTorch module
    patch = 4
    feature_dim = 32                # backbone.num_features
    embed_dim = 128                 # multiple of 128 -> lane-dense output, no slice

    key = jax.random.PRNGKey(0)
    kx, kp = jax.random.split(key)
    x = jax.random.normal(kx, (B, C, H, W), jnp.float32)
    params = init_params(kp, in_chans=C, patch=patch,
                         feature_dim=feature_dim, embed_dim=embed_dim)

    out = jax.block_until_ready(hybrid_embed_forward(x, params, patch=patch))

    # pure-JAX reference of the same math (same bf16 operand quantization, f32 accum)
    xr = x.reshape(B, C, H // patch, patch, W // patch, patch)
    xr = jnp.transpose(xr, (0, 2, 4, 3, 5, 1)).reshape(-1, patch * patch * C)
    xr = xr.astype(jnp.bfloat16)
    fr = jnp.dot(xr, params["bb_w"].astype(jnp.bfloat16),
                 preferred_element_type=jnp.float32) + params["bb_b"]
    fr = jnp.maximum(fr, 0.0)
    ref = jnp.dot(fr.astype(jnp.bfloat16), params["proj_w"].astype(jnp.bfloat16),
                  preferred_element_type=jnp.float32) + params["proj_b"]
    ref = ref.reshape(B, -1, embed_dim)

    assert out.shape == (B, (H // patch) * (W // patch), embed_dim)
    assert out.dtype == jnp.bfloat16
    assert jnp.allclose(out.astype(jnp.float32), ref, atol=2e-2, rtol=2e-2)
    print("KERNEL_OK")
</pallas_src>

<mosaic_0001>
module attributes {stable_mosaic.version = 11 : i64} {
  func.func @_hybrid_embed_kernel(%arg0: i32, %arg1: memref<16x48xbf16, #tpu.memory_space<vmem>>, %arg2: memref<48x128xbf16, #tpu.memory_space<vmem>>, %arg3: memref<1x128xf32, #tpu.memory_space<vmem>>, %arg4: memref<128x128xbf16, #tpu.memory_space<vmem>>, %arg5: memref<1x128xf32, #tpu.memory_space<vmem>>, %arg6: memref<16x128xbf16, #tpu.memory_space<vmem>>) attributes {dimension_semantics = [#tpu.dimension_semantics<parallel>], iteration_bounds = array<i64: 2>, scalar_prefetch = 0 : i64, scratch_operands = 0 : i64, tpu.core_type = #tpu.core_type<tc>, window_params = [{transform_indices = @transform_0, window_bounds = array<i64: 16, 48>}, {pipeline_mode = #tpu.pipeline_mode<synchronous>, transform_indices = @transform_1, window_bounds = array<i64: 48, 128>}, {pipeline_mode = #tpu.pipeline_mode<synchronous>, transform_indices = @transform_2, window_bounds = array<i64: 1, 128>}, {pipeline_mode = #tpu.pipeline_mode<synchronous>, transform_indices = @transform_3, window_bounds = array<i64: 128, 128>}, {pipeline_mode = #tpu.pipeline_mode<synchronous>, transform_indices = @transform_4, window_bounds = array<i64: 1, 128>}, {transform_indices = @transform_5, window_bounds = array<i64: 16, 128>}]} {
    %c0 = arith.constant 0 : index
    %c0_0 = arith.constant 0 : index
    %0 = vector.load %arg1[%c0, %c0_0] : memref<16x48xbf16, #tpu.memory_space<vmem>>, vector<16x48xbf16>
    %c0_1 = arith.constant 0 : index
    %c0_2 = arith.constant 0 : index
    %1 = vector.load %arg2[%c0_1, %c0_2] : memref<48x128xbf16, #tpu.memory_space<vmem>>, vector<48x128xbf16>
    %cst = arith.constant dense<0.000000e+00> : vector<16x128xf32>
    %2 = tpu.matmul %0, %1, %cst {dimension_numbers = #tpu.dot_dimension_numbers<[1], [0], [0], [1], [0, 0, 1, 1], [], []>} : vector<16x48xbf16>, vector<48x128xbf16>, vector<16x128xf32> -> vector<16x128xf32>
    %c0_3 = arith.constant 0 : index
    %c0_4 = arith.constant 0 : index
    %3 = vector.load %arg3[%c0_3, %c0_4] : memref<1x128xf32, #tpu.memory_space<vmem>>, vector<1x128xf32>
    %4 = vector.broadcast %3 : vector<1x128xf32> to vector<16x128xf32>
    %5 = arith.addf %2, %4 : vector<16x128xf32>
    %cst_5 = arith.constant 0.000000e+00 : f32
    %6 = vector.broadcast %cst_5 : f32 to vector<16x128xf32>
    %7 = arith.maximumf %5, %6 : vector<16x128xf32>
    %8 = arith.truncf %7 : vector<16x128xf32> to vector<16x128xbf16>
    %c0_6 = arith.constant 0 : index
    %c0_7 = arith.constant 0 : index
    %9 = vector.load %arg4[%c0_6, %c0_7] : memref<128x128xbf16, #tpu.memory_space<vmem>>, vector<128x128xbf16>
    %cst_8 = arith.constant dense<0.000000e+00> : vector<16x128xf32>
    %10 = tpu.matmul %8, %9, %cst_8 {dimension_numbers = #tpu.dot_dimension_numbers<[1], [0], [0], [1], [0, 0, 1, 1], [], []>} : vector<16x128xbf16>, vector<128x128xbf16>, vector<16x128xf32> -> vector<16x128xf32>
    %c0_9 = arith.constant 0 : index
    %c0_10 = arith.constant 0 : index
    %11 = vector.load %arg5[%c0_9, %c0_10] : memref<1x128xf32, #tpu.memory_space<vmem>>, vector<1x128xf32>
    %12 = vector.broadcast %11 : vector<1x128xf32> to vector<16x128xf32>
    %13 = arith.addf %10, %12 : vector<16x128xf32>
    %14 = arith.truncf %13 : vector<16x128xf32> to vector<16x128xbf16>
    %c0_11 = arith.constant 0 : index
    %c0_12 = arith.constant 0 : index
    %15 = vector.load %arg6[%c0_11, %c0_12] : memref<16x128xbf16, #tpu.memory_space<vmem>>, vector<16x128xbf16>
    tpu.vector_store %arg6[%c0_11, %c0_12], %14 {strides = array<i32>} : memref<16x128xbf16, #tpu.memory_space<vmem>>, vector<16x128xbf16>,
    return
  }
  func.func @transform_0(%arg0: i32) -> (i32, i32) {
    %c0_i32 = arith.constant 0 : i32
    %c0_i32_0 = arith.constant 0 : i32
    return %arg0, %c0_i32 : i32, i32
  }
  func.func @transform_1(%arg0: i32) -> (i32, i32) {
    %c0_i32 = arith.constant 0 : i32
    %c0_i32_0 = arith.constant 0 : i32
    %c0_i32_1 = arith.constant 0 : i32
    return %c0_i32, %c0_i32_0 : i32, i32
  }
  func.func @transform_2(%arg0: i32) -> (i32, i32) {
    %c0_i32 = arith.constant 0 : i32
    %c0_i32_0 = arith.constant 0 : i32
    %c0_i32_1 = arith.constant 0 : i32
    return %c0_i32, %c0_i32_0 : i32, i32
  }
  func.func @transform_3(%arg0: i32) -> (i32, i32) {
    %c0_i32 = arith.constant 0 : i32
    %c0_i32_0 = arith.constant 0 : i32
    %c0_i32_1 = arith.constant 0 : i32
    return %c0_i32, %c0_i32_0 : i32, i32
  }
  func.func @transform_4(%arg0: i32) -> (i32, i32) {
    %c0_i32 = arith.constant 0 : i32
    %c0_i32_0 = arith.constant 0 : i32
    %c0_i32_1 = arith.constant 0 : i32
    return %c0_i32, %c0_i32_0 : i32, i32
  }
  func.func @transform_5(%arg0: i32) -> (i32, i32) {
    %c0_i32 = arith.constant 0 : i32
    %c0_i32_0 = arith.constant 0 : i32
    return %arg0, %c0_i32 : i32, i32
  }
}

module attributes {stable_mosaic.version = 11 : i64} {
  func.func @_hybrid_embed_kernel(%arg0: i32, %arg1: memref<16x48xbf16, #tpu.memory_space<vmem>>, %arg2: memref<48x128xbf16, #tpu.memory_space<vmem>>, %arg3: memref<1x128xf32, #tpu.memory_space<vmem>>, %arg4: memref<128x128xbf16, #tpu.memory_space<vmem>>, %arg5: memref<1x128xf32, #tpu.memory_space<vmem>>, %arg6: memref<16x128xbf16, #tpu.memory_space<vmem>>) attributes {dimension_semantics = [#tpu.dimension_semantics<parallel>], iteration_bounds = array<i64: 2>, scalar_prefetch = 0 : i64, scratch_operands = 0 : i64, tpu.core_type = #tpu.core_type<tc>, window_params = [{transform_indices = @transform_0, window_bounds = array<i64: 16, 48>}, {pipeline_mode = #tpu.pipeline_mode<synchronous>, transform_indices = @transform_1, window_bounds = array<i64: 48, 128>}, {pipeline_mode = #tpu.pipeline_mode<synchronous>, transform_indices = @transform_2, window_bounds = array<i64: 1, 128>}, {pipeline_mode = #tpu.pipeline_mode<synchronous>, transform_indices = @transform_3, window_bounds = array<i64: 128, 128>}, {pipeline_mode = #tpu.pipeline_mode<synchronous>, transform_indices = @transform_4, window_bounds = array<i64: 1, 128>}, {transform_indices = @transform_5, window_bounds = array<i64: 16, 128>}]} {
    %c0 = arith.constant 0 : index
    %c0_0 = arith.constant 0 : index
    %0 = vector.load %arg1[%c0, %c0_0] : memref<16x48xbf16, #tpu.memory_space<vmem>>, vector<16x48xbf16>
    %c0_1 = arith.constant 0 : index
    %c0_2 = arith.constant 0 : index
    %1 = vector.load %arg2[%c0_1, %c0_2] : memref<48x128xbf16, #tpu.memory_space<vmem>>, vector<48x128xbf16>
    %cst = arith.constant dense<0.000000e+00> : vector<16x128xf32>
    %2 = tpu.matmul %0, %1, %cst {dimension_numbers = #tpu.dot_dimension_numbers<[1], [0], [0], [1], [0, 0, 1, 1], [], []>} : vector<16x48xbf16>, vector<48x128xbf16>, vector<16x128xf32> -> vector<16x128xf32>
    %c0_3 = arith.constant 0 : index
    %c0_4 = arith.constant 0 : index
    %3 = vector.load %arg3[%c0_3, %c0_4] : memref<1x128xf32, #tpu.memory_space<vmem>>, vector<1x128xf32>
    %4 = vector.broadcast %3 : vector<1x128xf32> to vector<16x128xf32>
    %5 = arith.addf %2, %4 : vector<16x128xf32>
    %cst_5 = arith.constant 0.000000e+00 : f32
    %6 = vector.broadcast %cst_5 : f32 to vector<16x128xf32>
    %7 = arith.maximumf %5, %6 : vector<16x128xf32>
    %8 = arith.truncf %7 : vector<16x128xf32> to vector<16x128xbf16>
    %c0_6 = arith.constant 0 : index
    %c0_7 = arith.constant 0 : index
    %9 = vector.load %arg4[%c0_6, %c0_7] : memref<128x128xbf16, #tpu.memory_space<vmem>>, vector<128x128xbf16>
    %cst_8 = arith.constant dense<0.000000e+00> : vector<16x128xf32>
    %10 = tpu.matmul %8, %9, %cst_8 {dimension_numbers = #tpu.dot_dimension_numbers<[1], [0], [0], [1], [0, 0, 1, 1], [], []>} : vector<16x128xbf16>, vector<128x128xbf16>, vector<16x128xf32> -> vector<16x128xf32>
    %c0_9 = arith.constant 0 : index
    %c0_10 = arith.constant 0 : index
    %11 = vector.load %arg5[%c0_9, %c0_10] : memref<1x128xf32, #tpu.memory_space<vmem>>, vector<1x128xf32>
    %12 = vector.broadcast %11 : vector<1x128xf32> to vector<16x128xf32>
    %13 = arith.addf %10, %12 : vector<16x128xf32>
    %14 = arith.truncf %13 : vector<16x128xf32> to vector<16x128xbf16>
    %c0_11 = arith.constant 0 : index
    %c0_12 = arith.constant 0 : index
    %15 = vector.load %arg6[%c0_11, %c0_12] : memref<16x128xbf16, #tpu.memory_space<vmem>>, vector<16x128xbf16>
    tpu.vector_store %arg6[%c0_11, %c0_12], %14 {strides = array<i32>} : memref<16x128xbf16, #tpu.memory_space<vmem>>, vector<16x128xbf16>,
    return
  }
  func.func @transform_0(%arg0: i32) -> (i32, i32) {
    %c0_i32 = arith.constant 0 : i32
    %c0_i32_0 = arith.constant 0 : i32
    return %arg0, %c0_i32 : i32, i32
  }
  func.func @transform_1(%arg0: i32) -> (i32, i32) {
    %c0_i32 = arith.constant 0 : i32
    %c0_i32_0 = arith.constant 0 : i32
    %c0_i32_1 = arith.constant 0 : i32
    return %c0_i32, %c0_i32_0 : i32, i32
  }
  func.func @transform_2(%arg0: i32) -> (i32, i32) {
    %c0_i32 = arith.constant 0 : i32
    %c0_i32_0 = arith.constant 0 : i32
    %c0_i32_1 = arith.constant 0 : i32
    return %c0_i32, %c0_i32_0 : i32, i32
  }
  func.func @transform_3(%arg0: i32) -> (i32, i32) {
    %c0_i32 = arith.constant 0 : i32
    %c0_i32_0 = arith.constant 0 : i32
    %c0_i32_1 = arith.constant 0 : i32
    return %c0_i32, %c0_i32_0 : i32, i32
  }
  func.func @transform_4(%arg0: i32) -> (i32, i32) {
    %c0_i32 = arith.constant 0 : i32
    %c0_i32_0 = arith.constant 0 : i32
    %c0_i32_1 = arith.constant 0 : i32
    return %c0_i32, %c0_i32_0 : i32, i32
  }
  func.func @transform_5(%arg0: i32) -> (i32, i32) {
    %c0_i32 = arith.constant 0 : i32
    %c0_i32_0 = arith.constant 0 : i32
    return %arg0, %c0_i32 : i32, i32
  }
}

</mosaic_0001>

<bundles_post_ra>
// kernel: tpu_custom_call.1
= control target key start
LH: loop header
LB: loop body
LE: loop exit
PB: predicated region body
PF: predicated region fallthrough
CT: control target
= control target key end

     0   :  { %10 = vsyncpa [#allocation3], 0  ;;  %s1212_s0 = inlined_call_operand.hbm [shape: bf16[32,48], index: 0, kind: input, shape index: {}]   ;;  %s1213_s1 = inlined_call_operand.hbm [shape: bf16[48,128], index: 1, kind: input, shape index: {}]   ;;  %s1214_s2 = inlined_call_operand.vmem [shape: f32[1,128], index: 2, kind: input, shape index: {}]   ;;  %s1215_s3 = inlined_call_operand.hbm [shape: bf16[128,128], index: 3, kind: input, shape index: {}]   ;;  %s1216_s4 = inlined_call_operand.vmem [shape: f32[1,128], index: 4, kind: input, shape index: {}]   ;;  %s1217_s5 = inlined_call_operand.hbm [shape: bf16[32,128], index: 5, kind: output, shape index: {}]  }
   0x1   :  { %12 = vsyncpa [#allocation3 + $0x1], 0 }
   0x2   :  { %13 = vsyncpa [#allocation6], 0 }
   0x3   :  { %14 = vsyncpa [#allocation4], 0 }
   0x4   :  { %16 = vsyncpa [#allocation4 + $0x1], 0  ;;  %s959_s18 = smov 0   ;;  %s961_s19 = smov 0  }
   0x5   :  { %s963_s20 = smov 0   ;;  %s965_s21 = smov 0  }
   0x6 LB: > { %s980_s22 = sadd.s32 4294967295, %s917_s21   ;;  %s589_s23 = sadd.s32 4294967294, %s917_s21   ;;  %s917_s21 = sphi %s965_s21, %s1237_s21   ;;  %s913_s20 = sphi %s963_s20, %s1236_s20   ;;  %s909_s19 = sphi %s961_s19, %s1235_s19   ;;  %s905_s18 = sphi %s959_s18, %s1234_s18  }
   0x7   : > { %p42_p0 = scmp.ne.s32.totalorder %s909_s19, %s905_s18  ;;  %p1218_p1 = scmp.eq.s32.totalorder %s980_s22, 0 }
   0x8   : > { %p156_p3 = scmp.eq.s32.totalorder %s589_s23, 1  ;;  %p590_p5 = scmp.ge.s32.totalorder %s917_s21, 1 }
   0x9   : > { %p989_p4 = por %p1218_p1, %p42_p0  ;;  %p163_p7 = scmp.lt.s32.totalorder %s917_s21, 3 }
   0xa   : > { %p994_p6 = por %p156_p3, %p42_p0  ;;  %s919_s27 = smov [#allocation5]  }
   0xb   : > { %s1221_s24 = scalar_select %p989_p4, 1, 0 }
   0xc   : > { %s1222_s25 = scalar_select %p994_p6, 1, 0 }
   0xd   : > { %p999_p8 = pnand %p590_p5, %p163_p7  ;;  %s175_s28 = sshll.u32 %s919_s27, 4  ;;  %s1003_s28 = int_to_ptr.vmem [resolvable:$true] %s175_s28 }
   0xe   : > { %s920_s30 = smov [#allocation7]   ;;  %s761_s9 = scalar_lea.hbm %s1213_s1, 384 }
   0xf   : > { %p688_p9 = pneg %p999_p8  ;;  %s191_s6 = sshll.u32 %s920_s30, 4  ;;  %s1014_s6 = int_to_ptr.vmem [resolvable:$true] %s191_s6 }
  0x10   : > { %p762_p12 = scmp.ne.s32.totalorder %s1213_s1, %s761_s9  ;;  %p768_p5 = scmp.lt.u32.totalorder %s761_s9, %s1213_s1 }
  0x11   : > { %p1010_p11 = pnand %p688_p9, %p1218_p1 }
  0x13   : > { %p763_p13 = pneg %p1010_p11 }
  0x15   : > { %p764_p0 = pnand %p763_p13, %p762_p12 }
  0x17   : > { %p765_p3 = pneg %p764_p0 }
  0x19   : > { %p770_p7 = pnand %p768_p5, %p765_p3 }
  0x1b   : > { %773 = shalt.err (!%p770_p7)
}
  0x1c   : > { %s774_s14 = scalar_lea.vmem %s1003_s28, 384  ;;  %p782_p2 = scmp.lt.s32.totalorder %s1003_s28, %s1003_s28 }
  0x1d   : > { %p775_p9 = scmp.ne.s32.totalorder %s1003_s28, %s774_s14  ;;  %p783_p12 = scmp.lt.s32.totalorder %s774_s14, %s774_s14 }
  0x1f   : > { %p777_p10 = pnand %p775_p9, %p763_p13  ;;  %p784_p0 = por %p783_p12, %p782_p2 }
  0x21   : > { %p778_p1 = pneg %p777_p10 }
  0x23   : > { %p785_p6 = pnand %p784_p0, %p778_p1 }
  0x25   : > { %788 = shalt.err (!%p785_p6)
}
  0x26   : > { %s921_s15 = smov 64   ;;  %s922_s16 = smov 4  }
  0x27   : > { %691 = dma.hbm_to_vmem [thread:$0]  (!%p1010_p11), %s1213_s1, 384, %s1003_s28, [#allocation6], %s921_s15, %s921_s15, %s922_s16  }
  0x28   : > { %s789_s7 = scalar_lea.hbm %s1215_s3, 1024 }
  0x29   : > { %p790_p1 = scmp.ne.s32.totalorder %s1215_s3, %s789_s7  ;;  %p796_p10 = scmp.lt.u32.totalorder %s789_s7, %s1215_s3 }
  0x2b   : > { %p792_p2 = pnand %p790_p1, %p763_p13 }
  0x2d   : > { %p793_p6 = pneg %p792_p2 }
  0x2f   : > { %p798_p3 = pnand %p796_p10, %p793_p6 }
  0x31   : > { %801 = shalt.err (!%p798_p3)
}
  0x32   : > { %s802_s28 = scalar_lea.vmem %s1014_s6, 1024  ;;  %p810_p12 = scmp.lt.s32.totalorder %s1014_s6, %s1014_s6 }
  0x33   : > { %p803_p5 = scmp.ne.s32.totalorder %s1014_s6, %s802_s28  ;;  %p811_p0 = scmp.lt.s32.totalorder %s802_s28, %s802_s28 }
  0x35   : > { %p805_p7 = pnand %p803_p5, %p763_p13  ;;  %p812_p1 = por %p811_p0, %p810_p12 }
  0x37   : > { %p806_p9 = pneg %p805_p7 }
  0x39   : > { %p813_p2 = pnand %p812_p1, %p806_p9 }
  0x3b   : > { %816 = shalt.err (!%p813_p2)
}
  0x3c   : > { %694 = dma.hbm_to_vmem [thread:$0]  (!%p1010_p11), %s1215_s3, 1024, %s1014_s6, [#allocation6], %s921_s15, %s921_s15, %s922_s16  }
  0x3d   : > { %s1075_s29 = sadd.s32 1, %s917_s21   ;;  %s29_s14 = sadd.s32 1, %s913_s20 }
  0x3e   : > { %s26_s17 = ssub.s32 %s917_s21, %s1075_s29  ;;  %p36_p13 = scmp.ne.s32.totalorder %s913_s20, %s909_s19 }
  0x3f   : > { %p27_p6 = scmp.eq.s32.totalorder %s26_s17, 0  ;;  %p37_p10 = scmp.eq.s32.totalorder %s917_s21, 0 }
  0x40   : > { %p1225_p3 = scmp.eq.s32.totalorder %s980_s22, 1  ;;  %p705_p7 = scmp.lt.s32.totalorder %s917_s21, 2 }
  0x41   : > { %s1091_s27 = scalar_select %p27_p6, %s913_s20, %s29_s14  }
  0x42   : > { %p1085_p5 = por %p1225_p3, %p36_p13  ;;  %p38_p9 = por %p37_p10, %p36_p13 }
  0x43   : > { %s208_s30 = sand.u32 1, %s913_s20   ;;  %s624_s6 = sshll.u32 %s917_s21, 7 }
  0x44   : > { %s1226_s23 = scalar_select %p1085_p5, 1, 0 }
  0x45   : > { %s594_s7 = sshll.u32 %s208_s30, 3  ;;  %s1098_s10 = scalar_lea.hbm %s1212_s0, %s624_s6 }
  0x46   : > { %s212_s11 = scalar_lea.vmem [#allocation2], %s594_s7  ;;  %p1102_p11 = pnand %p705_p7, %p38_p9 }
  0x47   : > { %s219_s28 = sshll.u32 %s212_s11, 4  ;;  %s1106_s13 = scalar_lea.sflag [#allocation3], %s208_s30  ;;  %s1100_s28 = int_to_ptr.vmem [resolvable:$true] %s219_s28 }
  0x48   : > { %s817_s14 = scalar_lea.hbm %s1098_s10, 128  ;;  %p819_p0 = pneg %p1102_p11 }
  0x49   : > { %p818_p12 = scmp.ne.s32.totalorder %s1098_s10, %s817_s14  ;;  %s822_s6 = scalar_lea.hbm %s1212_s0, 256 }
  0x4a   : > { %p823_p13 = scmp.lt.u32.totalorder %s1098_s10, %s1212_s0  ;;  %p824_p6 = scmp.lt.u32.totalorder %s822_s6, %s817_s14 }
  0x4b   : > { %p820_p1 = pnand %p819_p0, %p818_p12  ;;  %p826_p3 = scmp.lt.u32.totalorder %s817_s14, %s1098_s10 }
  0x4c   : > { %p825_p10 = por %p824_p6, %p823_p13 }
  0x4d   : > { %p821_p2 = pneg %p820_p1 }
  0x4e   : > { %p827_p7 = por %p826_p3, %p825_p10 }
  0x50   : > { %p828_p9 = pnand %p827_p7, %p821_p2 }
  0x52   : > { %831 = shalt.err (!%p828_p9)
}
  0x53   : > { %s832_s30 = scalar_lea.vmem %s1100_s28, 128  ;;  %s923_s11 = smov [#allocation2]  }
  0x54   : > { %p833_p12 = scmp.ne.s32.totalorder %s1100_s28, %s832_s30  ;;  %s837_s17 = sshll.u32 %s923_s11, 4  ;;  %s838_s17 = int_to_ptr.vmem [resolvable:$false] %s837_s17 }
  0x55   : > { %s839_s7 = scalar_lea.vmem %s838_s17, 256  ;;  %p840_p4 = scmp.lt.s32.totalorder %s1100_s28, %s838_s17 }
  0x56   : > { %p835_p1 = pnand %p833_p12, %p819_p0  ;;  %p841_p13 = scmp.lt.s32.totalorder %s839_s7, %s832_s30 }
  0x58   : > { %p836_p5 = pneg %p835_p1  ;;  %p842_p6 = por %p841_p13, %p840_p4 }
  0x5a   : > { %p843_p10 = pnand %p842_p6, %p836_p5 }
  0x5c   : > { %846 = shalt.err (!%p843_p10)
}
  0x5d   : > { %698 = dma.hbm_to_vmem [thread:$0]  (!%p1102_p11), %s1098_s10, 128, %s1100_s28, %s1106_s13, %s921_s15, %s921_s15, %s922_s16  }
  0x5e   : > { %231 = sbr.rel (%p999_p8) target bundleno = 572 (0x23c), region = 40  ;;  %s1140_s14 = sand.u32 (!%p999_p8), 1, %s909_s19  }
  0x5f   : > { %s598_s6 = sshll.u32 (!%p999_p8), %s1140_s14, 3  ;;  %s234_s8 = scalar_lea.sflag (!%p999_p8), [#allocation3], %s1140_s14 }
  0x60   : > { %s237_s12 = scalar_lea.vmem (!%p999_p8), [#allocation2], %s598_s6  ;;  %p1228_p4 = scmp.ne.s32.totalorder (!%p999_p8), %s1221_s24, 0 }
  0x65   : > { %892 = dma.done.wait (%p1228_p4), %s234_s8, 128  }
  0x66   : > { %894 = vsyncadd (%p1228_p4), %s234_s8, 4294967168  ;;  %p1229_p5 = scmp.eq.s32.totalorder %s980_s22, 0 }
  0x68   : > { %896 = dma.done.wait (%p1229_p5), [#allocation6], 1408   ;;  %p1230_p8 = pmov %p1229_p5 }
  0x69   : > { %v924_v0 = vmov 0.0   ;;  %vm925_vm0 = vmmov 0   ;;  %v749_v1 = vld [vmem:[#allocation5] sm:$0xff]   ;;  %v750_v2 = vld [vmem:[#allocation5 + $0x8] sm:$0xff]   ;;  %v753_v3 = vld [vmem:[#allocation7] sm:$0xff]   ;;  %vm313_vm1 = vcmask 392192  }
  0x6a   : > { %898 = vsyncadd (%p1230_p8), [#allocation6], 4294965888  ;;  %646 = vmatprep.subr.bf16.mxu0 %v924_v0  ;;  %652 = vmatprep.mubr.msk.bf16.mxu0 %vm925_vm0, %v924_v0  ;;  %v751_v4 = vld [vmem:[#allocation5 + $0x10] sm:$0xff]   ;;  %v754_v5 = vld [vmem:[#allocation7 + $0x8] sm:$0xff]   ;;  %s271_s10 = scalar_lea.vmem [#allocation8], %s598_s6  ;;  %s627_s13 = sshll.u32 %s980_s22, 7 }
  0x6b   : > { %656 = vmatprep.subr.bf16.mxu1 %v924_v0  ;;  %672 = vmatprep.mubr.msk.bf16.mxu1 %vm925_vm0, %v924_v0  ;;  %v752_v6 = vld [vmem:[%s237_s12] sm:$0xff]   ;;  %v755_v7 = vld [vmem:[#allocation7 + $0x10] sm:$0xff]   ;;  %v758_v10 = vld [vmem:[#allocation7 + $0x28] sm:$0xff]   ;;  %s497_s28 = sshll.u32 %s271_s10, 4  ;;  %s1168_s11 = scalar_lea.hbm %s1217_s5, %s627_s13  ;;  %s1163_s28 = int_to_ptr.vmem [resolvable:$true] %s497_s28 }
  0x6c   : > { %647 = vmatpush3.bf16.msra.mxu0 %v749_v1  ;;  %657 = vmatpush3.bf16.msra.mxu1 %v753_v3  ;;  %v756_v8 = vld [vmem:[#allocation7 + $0x18] sm:$0xff]   ;;  %v757_v9 = vld [vmem:[#allocation7 + $0x20] sm:$0xff]   ;;  %v759_v11 = vld [vmem:[#allocation7 + $0x30] sm:$0xff]   ;;  %s484_s17 = scalar_lea.sflag [#allocation4], %s1140_s14  ;;  %s847_s7 = scalar_lea.vmem %s1163_s28, 128 }
  0x6d   : > { %648 = vmatprep.subr.bf16.mxu0 %v924_v0  ;;  %658 = vmatprep.subr.bf16.mxu1 %v924_v0  ;;  %v760_v12 = vld [vmem:[#allocation7 + $0x38] sm:$0xff]   ;;  %p848_p11 = scmp.ne.s32.totalorder %s1163_s28, %s847_s7  ;;  %p1231_p0 = scmp.ne.s32.totalorder %s1226_s23, 0 }
  0x6e   : > { %v602_v13 = vld [vmem:[%s1214_s2] ss:$0 sm:$0xff]  ;;  %s926_s22 = smov [#allocation8]  }
  0x6f   : > { %v608_v23 = vld [vmem:[%s1216_s4] ss:$0 sm:$0xff]  ;;  %p849_p2 = pnand %p848_p11, %p1231_p0  ;;  %s851_s6 = sshll.u32 %s926_s22, 4  ;;  %s852_s6 = int_to_ptr.vmem [resolvable:$false] %s851_s6 }
  0x70   : > { %649 = vmatpush3.bf16.msra.mxu0 %v750_v2  ;;  %659 = vmatpush3.bf16.msra.mxu1 %v754_v5  ;;  %s853_s8 = scalar_lea.vmem %s852_s6, 256  ;;  %p854_p7 = scmp.lt.s32.totalorder %s1163_s28, %s852_s6 }
  0x71   : > { %650 = vmatprep.subr.bf16.mxu0 %v924_v0  ;;  %660 = vmatprep.subr.bf16.mxu1 %v924_v0  ;;  %p850_p3 = pneg %p849_p2  ;;  %p855_p9 = scmp.lt.s32.totalorder %s853_s8, %s847_s7 }
  0x73   : > { %p856_p12 = por %p855_p9, %p854_p7 }
  0x74   : > { %651 = vmatpush3.bf16.msra.mxu0 %v751_v4  ;;  %661 = vmatpush3.bf16.msra.mxu1 %v755_v7 }
  0x75   : > { %662 = vmatprep.subr.bf16.mxu1 %v924_v0  ;;  %p857_p1 = pnand %p856_p12, %p850_p3 }
  0x77   : > { %653 = vmatmul.mubr.msk.bf16.vlgmr.msra.gmra.mrb[0].mxu0 %vm313_vm1, %v752_v6 }
  0x78   : > { %663 = vmatpush3.bf16.msra.mxu1 %v756_v8 }
  0x79   : > { %664 = vmatprep.subr.bf16.mxu1 %v924_v0 }
  0x7c   : > { %665 = vmatpush3.bf16.msra.mxu1 %v757_v9 }
  0x7d   : > { %666 = vmatprep.subr.bf16.mxu1 %v924_v0 }
  0x80   : > { %667 = vmatpush3.bf16.msra.mxu1 %v758_v10 }
  0x81   : > { %668 = vmatprep.subr.bf16.mxu1 %v924_v0 }
  0x84   : > { %669 = vmatpush3.bf16.msra.mxu1 %v759_v11 }
  0x85   : > { %670 = vmatprep.subr.bf16.mxu1 %v924_v0 }
  0x88   : > { %671 = vmatpush3.bf16.msra.mxu1 %v760_v12 }
 0x14a   : > { %v351_v14 = vpop.f32.mrb[0].mxu0 }
 0x14b   : > { %v352_v15 = vadd.f32 %v602_v13, %v351_v14  ;;  %v654_v16 = vpop.f32.mrb[1].mxu0 }
 0x14c   : > { %v354_v17 = vpop.f32.mrb[2].mxu0 }
 0x14d   : > { %v355_v18 = vadd.f32 %v602_v13, %v354_v17  ;;  %v655_v19 = vpop.f32.mrb[3].mxu0  ;;  %v358_v20 = vmax.f32 %v352_v15, 0.0 }
 0x14f   : > { %v359_v21 = vmax.f32 %v355_v18, 0.0 }
 0x151   : > { %v360_v22 = vpack.c.bf16 %v359_v21, %v358_v20 }
 0x153   : > { %673 = vmatmul.mubr.bf16.vlgmr.msra.gmra.mrb[0].mxu1 %v360_v22 }
 0x226   : > { %v466_v24 = vpop.f32.mrb[0].mxu1 }
 0x227   : > { %v674_v25 = vpop.f32.mrb[1].mxu1  ;;  %v467_v27 = vadd.f32 %v608_v23, %v466_v24 }
 0x228   : > { %v469_v26 = vpop.f32.mrb[2].mxu1 }
 0x229   : > { %v470_v28 = vadd.f32 %v608_v23, %v469_v26  ;;  %v675_v29 = vpop.f32.mrb[3].mxu1 }
 0x22b   : > { %v631_v30 = vpack.c.bf16 %v470_v28, %v467_v27 }
 0x22d   : > { %632 = vst [vmem:[%s271_s10] sm:$0xff] %v631_v30  }
 0x22e   : > { %860 = shalt.err (!%p857_p1)
}
 0x22f   : > { %s861_s12 = scalar_lea.hbm %s1168_s11, 128  ;;  %s865_s15 = scalar_lea.hbm %s1217_s5, 256 }
 0x230   : > { %p862_p13 = scmp.ne.s32.totalorder %s1168_s11, %s861_s12  ;;  %p866_p4 = scmp.lt.u32.totalorder %s1168_s11, %s1217_s5 }
 0x231   : > { %p867_p5 = scmp.lt.u32.totalorder %s865_s15, %s861_s12  ;;  %p869_p11 = scmp.lt.u32.totalorder %s861_s12, %s1168_s11 }
 0x232   : > { %p863_p6 = pnand %p862_p13, %p1231_p0 }
 0x233   : > { %p868_p8 = por %p867_p5, %p866_p4 }
 0x234   : > { %p864_p10 = pneg %p863_p6 }
 0x235   : > { %p870_p2 = por %p869_p11, %p868_p8 }
 0x237   : > { %p871_p3 = pnand %p870_p2, %p864_p10 }
 0x239   : > { %874 = shalt.err (!%p871_p3)
}
 0x23a   : > { %s927_s13 = smov 64   ;;  %s928_s9 = smov 4  }
 0x23b   : > { %686 = dma.vmem_to_hbm [thread:$0]  (%p1231_p0), %s1163_s28, 128, %s1168_s11, %s484_s17, %s927_s13, %s927_s13, %s928_s9  }
 0x23c PF: > { %s512_s30 = sand.u32 1, %s905_s18   ;;  %p1232_p7 = scmp.ne.s32.totalorder %s1222_s25, 0 }
 0x23d   : > { %p1233_p9 = scmp.ge.s32.totalorder %s917_s21, 2  ;;  %s513_s7 = scalar_lea.sflag [#allocation4], %s512_s30 }
 0x23f   : > { %p700_p12 = pnand %p1233_p9, %p1232_p7 }
 0x241   : > { %900 = dma.done.wait (!%p700_p12), %s513_s7, 128  }
 0x242   : > { %902 = vsyncadd (!%p700_p12), %s513_s7, 4294967168  ;;  %p19_p1 = scmp.ge.s32.totalorder %s1075_s29, 4   ;;  %s1234_s18 = smov %s909_s19 }
 0x243   : > { %s1235_s19 = smov %s913_s20  ;;  %s1236_s20 = smov %s1091_s27 }
 0x244   : > { %s1237_s21 = smov %s1075_s29  ;;  %21 = sbr.rel (!%p19_p1) target bundleno = 6 (0x6), region = 93 }
 0x24b   :  { %518 = vsyncpa [#allocation3], 1 }
 0x24c   :  { %520 = vsyncpa [#allocation3 + $0x1], 1 }
 0x24d   :  { %521 = vsyncpa [#allocation6], 1 }
 0x24e   :  { %522 = vsyncpa [#allocation4], 1 }
 0x24f   :  { %524 = vsyncpa [#allocation4 + $0x1], 1 }

// kernel: tpu_custom_call.1
= control target key start
LH: loop header
LB: loop body
LE: loop exit
PB: predicated region body
PF: predicated region fallthrough
CT: control target
= control target key end

     0   :  { %10 = vsyncpa [#allocation3], 0  ;;  %s1212_s0 = inlined_call_operand.hbm [shape: bf16[32,48], index: 0, kind: input, shape index: {}]   ;;  %s1213_s1 = inlined_call_operand.hbm [shape: bf16[48,128], index: 1, kind: input, shape index: {}]   ;;  %s1214_s2 = inlined_call_operand.vmem [shape: f32[1,128], index: 2, kind: input, shape index: {}]   ;;  %s1215_s3 = inlined_call_operand.hbm [shape: bf16[128,128], index: 3, kind: input, shape index: {}]   ;;  %s1216_s4 = inlined_call_operand.vmem [shape: f32[1,128], index: 4, kind: input, shape index: {}]   ;;  %s1217_s5 = inlined_call_operand.hbm [shape: bf16[32,128], index: 5, kind: output, shape index: {}]  }
   0x1   :  { %12 = vsyncpa [#allocation3 + $0x1], 0 }
   0x2   :  { %13 = vsyncpa [#allocation6], 0 }
   0x3   :  { %14 = vsyncpa [#allocation4], 0 }
   0x4   :  { %16 = vsyncpa [#allocation4 + $0x1], 0  ;;  %s959_s18 = smov 0   ;;  %s961_s19 = smov 0  }
   0x5   :  { %s963_s20 = smov 0   ;;  %s965_s21 = smov 0  }
   0x6 LB: > { %s980_s22 = sadd.s32 4294967295, %s917_s21   ;;  %s589_s23 = sadd.s32 4294967294, %s917_s21   ;;  %s917_s21 = sphi %s965_s21, %s1237_s21   ;;  %s913_s20 = sphi %s963_s20, %s1236_s20   ;;  %s909_s19 = sphi %s961_s19, %s1235_s19   ;;  %s905_s18 = sphi %s959_s18, %s1234_s18  }
   0x7   : > { %p42_p0 = scmp.ne.s32.totalorder %s909_s19, %s905_s18  ;;  %p1218_p1 = scmp.eq.s32.totalorder %s980_s22, 0 }
   0x8   : > { %p156_p3 = scmp.eq.s32.totalorder %s589_s23, 1  ;;  %p590_p5 = scmp.ge.s32.totalorder %s917_s21, 1 }
   0x9   : > { %p989_p4 = por %p1218_p1, %p42_p0  ;;  %p163_p7 = scmp.lt.s32.totalorder %s917_s21, 3 }
   0xa   : > { %p994_p6 = por %p156_p3, %p42_p0  ;;  %s919_s27 = smov [#allocation5]  }
   0xb   : > { %s1221_s24 = scalar_select %p989_p4, 1, 0 }
   0xc   : > { %s1222_s25 = scalar_select %p994_p6, 1, 0 }
   0xd   : > { %p999_p8 = pnand %p590_p5, %p163_p7  ;;  %s175_s28 = sshll.u32 %s919_s27, 4  ;;  %s1003_s28 = int_to_ptr.vmem [resolvable:$true] %s175_s28 }
   0xe   : > { %s920_s30 = smov [#allocation7]   ;;  %s761_s9 = scalar_lea.hbm %s1213_s1, 384 }
   0xf   : > { %p688_p9 = pneg %p999_p8  ;;  %s191_s6 = sshll.u32 %s920_s30, 4  ;;  %s1014_s6 = int_to_ptr.vmem [resolvable:$true] %s191_s6 }
  0x10   : > { %p762_p12 = scmp.ne.s32.totalorder %s1213_s1, %s761_s9  ;;  %p768_p5 = scmp.lt.u32.totalorder %s761_s9, %s1213_s1 }
  0x11   : > { %p1010_p11 = pnand %p688_p9, %p1218_p1 }
  0x13   : > { %p763_p13 = pneg %p1010_p11 }
  0x15   : > { %p764_p0 = pnand %p763_p13, %p762_p12 }
  0x17   : > { %p765_p3 = pneg %p764_p0 }
  0x19   : > { %p770_p7 = pnand %p768_p5, %p765_p3 }
  0x1b   : > { %773 = shalt.err (!%p770_p7)
}
  0x1c   : > { %s774_s14 = scalar_lea.vmem %s1003_s28, 384  ;;  %p782_p2 = scmp.lt.s32.totalorder %s1003_s28, %s1003_s28 }
  0x1d   : > { %p775_p9 = scmp.ne.s32.totalorder %s1003_s28, %s774_s14  ;;  %p783_p12 = scmp.lt.s32.totalorder %s774_s14, %s774_s14 }
  0x1f   : > { %p777_p10 = pnand %p775_p9, %p763_p13  ;;  %p784_p0 = por %p783_p12, %p782_p2 }
  0x21   : > { %p778_p1 = pneg %p777_p10 }
  0x23   : > { %p785_p6 = pnand %p784_p0, %p778_p1 }
  0x25   : > { %788 = shalt.err (!%p785_p6)
}
  0x26   : > { %s921_s15 = smov 64   ;;  %s922_s16 = smov 4  }
  0x27   : > { %691 = dma.hbm_to_vmem [thread:$0]  (!%p1010_p11), %s1213_s1, 384, %s1003_s28, [#allocation6], %s921_s15, %s921_s15, %s922_s16  }
  0x28   : > { %s789_s7 = scalar_lea.hbm %s1215_s3, 1024 }
  0x29   : > { %p790_p1 = scmp.ne.s32.totalorder %s1215_s3, %s789_s7  ;;  %p796_p10 = scmp.lt.u32.totalorder %s789_s7, %s1215_s3 }
  0x2b   : > { %p792_p2 = pnand %p790_p1, %p763_p13 }
  0x2d   : > { %p793_p6 = pneg %p792_p2 }
  0x2f   : > { %p798_p3 = pnand %p796_p10, %p793_p6 }
  0x31   : > { %801 = shalt.err (!%p798_p3)
}
  0x32   : > { %s802_s28 = scalar_lea.vmem %s1014_s6, 1024  ;;  %p810_p12 = scmp.lt.s32.totalorder %s1014_s6, %s1014_s6 }
  0x33   : > { %p803_p5 = scmp.ne.s32.totalorder %s1014_s6, %s802_s28  ;;  %p811_p0 = scmp.lt.s32.totalorder %s802_s28, %s802_s28 }
  0x35   : > { %p805_p7 = pnand %p803_p5, %p763_p13  ;;  %p812_p1 = por %p811_p0, %p810_p12 }
  0x37   : > { %p806_p9 = pneg %p805_p7 }
  0x39   : > { %p813_p2 = pnand %p812_p1, %p806_p9 }
  0x3b   : > { %816 = shalt.err (!%p813_p2)
}
  0x3c   : > { %694 = dma.hbm_to_vmem [thread:$0]  (!%p1010_p11), %s1215_s3, 1024, %s1014_s6, [#allocation6], %s921_s15, %s921_s15, %s922_s16  }
  0x3d   : > { %s1075_s29 = sadd.s32 1, %s917_s21   ;;  %s29_s14 = sadd.s32 1, %s913_s20 }
  0x3e   : > { %s26_s17 = ssub.s32 %s917_s21, %s1075_s29  ;;  %p36_p13 = scmp.ne.s32.totalorder %s913_s20, %s909_s19 }
  0x3f   : > { %p27_p6 = scmp.eq.s32.totalorder %s26_s17, 0  ;;  %p37_p10 = scmp.eq.s32.totalorder %s917_s21, 0 }
  0x40   : > { %p1225_p3 = scmp.eq.s32.totalorder %s980_s22, 1  ;;  %p705_p7 = scmp.lt.s32.totalorder %s917_s21, 2 }
  0x41   : > { %s1091_s27 = scalar_select %p27_p6, %s913_s20, %s29_s14  }
  0x42   : > { %p1085_p5 = por %p1225_p3, %p36_p13  ;;  %p38_p9 = por %p37_p10, %p36_p13 }
  0x43   : > { %s208_s30 = sand.u32 1, %s913_s20   ;;  %s624_s6 = sshll.u32 %s917_s21, 7 }
  0x44   : > { %s1226_s23 = scalar_select %p1085_p5, 1, 0 }
  0x45   : > { %s594_s7 = sshll.u32 %s208_s30, 3  ;;  %s1098_s10 = scalar_lea.hbm %s1212_s0, %s624_s6 }
  0x46   : > { %s212_s11 = scalar_lea.vmem [#allocation2], %s594_s7  ;;  %p1102_p11 = pnand %p705_p7, %p38_p9 }
  0x47   : > { %s219_s28 = sshll.u32 %s212_s11, 4  ;;  %s1106_s13 = scalar_lea.sflag [#allocation3], %s208_s30  ;;  %s1100_s28 = int_to_ptr.vmem [resolvable:$true] %s219_s28 }
  0x48   : > { %s817_s14 = scalar_lea.hbm %s1098_s10, 128  ;;  %p819_p0 = pneg %p1102_p11 }
  0x49   : > { %p818_p12 = scmp.ne.s32.totalorder %s1098_s10, %s817_s14  ;;  %s822_s6 = scalar_lea.hbm %s1212_s0, 256 }
  0x4a   : > { %p823_p13 = scmp.lt.u32.totalorder %s1098_s10, %s1212_s0  ;;  %p824_p6 = scmp.lt.u32.totalorder %s822_s6, %s817_s14 }
  0x4b   : > { %p820_p1 = pnand %p819_p0, %p818_p12  ;;  %p826_p3 = scmp.lt.u32.totalorder %s817_s14, %s1098_s10 }
  0x4c   : > { %p825_p10 = por %p824_p6, %p823_p13 }
  0x4d   : > { %p821_p2 = pneg %p820_p1 }
  0x4e   : > { %p827_p7 = por %p826_p3, %p825_p10 }
  0x50   : > { %p828_p9 = pnand %p827_p7, %p821_p2 }
  0x52   : > { %831 = shalt.err (!%p828_p9)
}
  0x53   : > { %s832_s30 = scalar_lea.vmem %s1100_s28, 128  ;;  %s923_s11 = smov [#allocation2]  }
  0x54   : > { %p833_p12 = scmp.ne.s32.totalorder %s1100_s28, %s832_s30  ;;  %s837_s17 = sshll.u32 %s923_s11, 4  ;;  %s838_s17 = int_to_ptr.vmem [resolvable:$false] %s837_s17 }
  0x55   : > { %s839_s7 = scalar_lea.vmem %s838_s17, 256  ;;  %p840_p4 = scmp.lt.s32.totalorder %s1100_s28, %s838_s17 }
  0x56   : > { %p835_p1 = pnand %p833_p12, %p819_p0  ;;  %p841_p13 = scmp.lt.s32.totalorder %s839_s7, %s832_s30 }
  0x58   : > { %p836_p5 = pneg %p835_p1  ;;  %p842_p6 = por %p841_p13, %p840_p4 }
  0x5a   : > { %p843_p10 = pnand %p842_p6, %p836_p5 }
  0x5c   : > { %846 = shalt.err (!%p843_p10)
}
  0x5d   : > { %698 = dma.hbm_to_vmem [thread:$0]  (!%p1102_p11), %s1098_s10, 128, %s1100_s28, %s1106_s13, %s921_s15, %s921_s15, %s922_s16  }
  0x5e   : > { %231 = sbr.rel (%p999_p8) target bundleno = 572 (0x23c), region = 40  ;;  %s1140_s14 = sand.u32 (!%p999_p8), 1, %s909_s19  }
  0x5f   : > { %s598_s6 = sshll.u32 (!%p999_p8), %s1140_s14, 3  ;;  %s234_s8 = scalar_lea.sflag (!%p999_p8), [#allocation3], %s1140_s14 }
  0x60   : > { %s237_s12 = scalar_lea.vmem (!%p999_p8), [#allocation2], %s598_s6  ;;  %p1228_p4 = scmp.ne.s32.totalorder (!%p999_p8), %s1221_s24, 0 }
  0x65   : > { %892 = dma.done.wait (%p1228_p4), %s234_s8, 128  }
  0x66   : > { %894 = vsyncadd (%p1228_p4), %s234_s8, 4294967168  ;;  %p1229_p5 = scmp.eq.s32.totalorder %s980_s22, 0 }
  0x68   : > { %896 = dma.done.wait (%p1229_p5), [#allocation6], 1408   ;;  %p1230_p8 = pmov %p1229_p5 }
  0x69   : > { %v924_v0 = vmov 0.0   ;;  %vm925_vm0 = vmmov 0   ;;  %v749_v1 = vld [vmem:[#allocation5] sm:$0xff]   ;;  %v750_v2 = vld [vmem:[#allocation5 + $0x8] sm:$0xff]   ;;  %v753_v3 = vld [vmem:[#allocation7] sm:$0xff]   ;;  %vm313_vm1 = vcmask 392192  }
  0x6a   : > { %898 = vsyncadd (%p1230_p8), [#allocation6], 4294965888  ;;  %646 = vmatprep.subr.bf16.mxu0 %v924_v0  ;;  %652 = vmatprep.mubr.msk.bf16.mxu0 %vm925_vm0, %v924_v0  ;;  %v751_v4 = vld [vmem:[#allocation5 + $0x10] sm:$0xff]   ;;  %v754_v5 = vld [vmem:[#allocation7 + $0x8] sm:$0xff]   ;;  %s271_s10 = scalar_lea.vmem [#allocation8], %s598_s6  ;;  %s627_s13 = sshll.u32 %s980_s22, 7 }
  0x6b   : > { %656 = vmatprep.subr.bf16.mxu1 %v924_v0  ;;  %672 = vmatprep.mubr.msk.bf16.mxu1 %vm925_vm0, %v924_v0  ;;  %v752_v6 = vld [vmem:[%s237_s12] sm:$0xff]   ;;  %v755_v7 = vld [vmem:[#allocation7 + $0x10] sm:$0xff]   ;;  %v758_v10 = vld [vmem:[#allocation7 + $0x28] sm:$0xff]   ;;  %s497_s28 = sshll.u32 %s271_s10, 4  ;;  %s1168_s11 = scalar_lea.hbm %s1217_s5, %s627_s13  ;;  %s1163_s28 = int_to_ptr.vmem [resolvable:$true] %s497_s28 }
  0x6c   : > { %647 = vmatpush3.bf16.msra.mxu0 %v749_v1  ;;  %657 = vmatpush3.bf16.msra.mxu1 %v753_v3  ;;  %v756_v8 = vld [vmem:[#allocation7 + $0x18] sm:$0xff]   ;;  %v757_v9 = vld [vmem:[#allocation7 + $0x20] sm:$0xff]   ;;  %v759_v11 = vld [vmem:[#allocation7 + $0x30] sm:$0xff]   ;;  %s484_s17 = scalar_lea.sflag [#allocation4], %s1140_s14  ;;  %s847_s7 = scalar_lea.vmem %s1163_s28, 128 }
  0x6d   : > { %648 = vmatprep.subr.bf16.mxu0 %v924_v0  ;;  %658 = vmatprep.subr.bf16.mxu1 %v924_v0  ;;  %v760_v12 = vld [vmem:[#allocation7 + $0x38] sm:$0xff]   ;;  %p848_p11 = scmp.ne.s32.totalorder %s1163_s28, %s847_s7  ;;  %p1231_p0 = scmp.ne.s32.totalorder %s1226_s23, 0 }
  0x6e   : > { %v602_v13 = vld [vmem:[%s1214_s2] ss:$0 sm:$0xff]  ;;  %s926_s22 = smov [#allocation8]  }
  0x6f   : > { %v608_v23 = vld [vmem:[%s1216_s4] ss:$0 sm:$0xff]  ;;  %p849_p2 = pnand %p848_p11, %p1231_p0  ;;  %s851_s6 = sshll.u32 %s926_s22, 4  ;;  %s852_s6 = int_to_ptr.vmem [resolvable:$false] %s851_s6 }
  0x70   : > { %649 = vmatpush3.bf16.msra.mxu0 %v750_v2  ;;  %659 = vmatpush3.bf16.msra.mxu1 %v754_v5  ;;  %s853_s8 = scalar_lea.vmem %s852_s6, 256  ;;  %p854_p7 = scmp.lt.s32.totalorder %s1163_s28, %s852_s6 }
  0x71   : > { %650 = vmatprep.subr.bf16.mxu0 %v924_v0  ;;  %660 = vmatprep.subr.bf16.mxu1 %v924_v0  ;;  %p850_p3 = pneg %p849_p2  ;;  %p855_p9 = scmp.lt.s32.totalorder %s853_s8, %s847_s7 }
  0x73   : > { %p856_p12 = por %p855_p9, %p854_p7 }
  0x74   : > { %651 = vmatpush3.bf16.msra.mxu0 %v751_v4  ;;  %661 = vmatpush3.bf16.msra.mxu1 %v755_v7 }
  0x75   : > { %662 = vmatprep.subr.bf16.mxu1 %v924_v0  ;;  %p857_p1 = pnand %p856_p12, %p850_p3 }
  0x77   : > { %653 = vmatmul.mubr.msk.bf16.vlgmr.msra.gmra.mrb[0].mxu0 %vm313_vm1, %v752_v6 }
  0x78   : > { %663 = vmatpush3.bf16.msra.mxu1 %v756_v8 }
  0x79   : > { %664 = vmatprep.subr.bf16.mxu1 %v924_v0 }
  0x7c   : > { %665 = vmatpush3.bf16.msra.mxu1 %v757_v9 }
  0x7d   : > { %666 = vmatprep.subr.bf16.mxu1 %v924_v0 }
  0x80   : > { %667 = vmatpush3.bf16.msra.mxu1 %v758_v10 }
  0x81   : > { %668 = vmatprep.subr.bf16.mxu1 %v924_v0 }
  0x84   : > { %669 = vmatpush3.bf16.msra.mxu1 %v759_v11 }
  0x85   : > { %670 = vmatprep.subr.bf16.mxu1 %v924_v0 }
  0x88   : > { %671 = vmatpush3.bf16.msra.mxu1 %v760_v12 }
 0x14a   : > { %v351_v14 = vpop.f32.mrb[0].mxu0 }
 0x14b   : > { %v352_v15 = vadd.f32 %v602_v13, %v351_v14  ;;  %v654_v16 = vpop.f32.mrb[1].mxu0 }
 0x14c   : > { %v354_v17 = vpop.f32.mrb[2].mxu0 }
 0x14d   : > { %v355_v18 = vadd.f32 %v602_v13, %v354_v17  ;;  %v655_v19 = vpop.f32.mrb[3].mxu0  ;;  %v358_v20 = vmax.f32 %v352_v15, 0.0 }
 0x14f   : > { %v359_v21 = vmax.f32 %v355_v18, 0.0 }
 0x151   : > { %v360_v22 = vpack.c.bf16 %v359_v21, %v358_v20 }
 0x153   : > { %673 = vmatmul.mubr.bf16.vlgmr.msra.gmra.mrb[0].mxu1 %v360_v22 }
 0x226   : > { %v466_v24 = vpop.f32.mrb[0].mxu1 }
 0x227   : > { %v674_v25 = vpop.f32.mrb[1].mxu1  ;;  %v467_v27 = vadd.f32 %v608_v23, %v466_v24 }
 0x228   : > { %v469_v26 = vpop.f32.mrb[2].mxu1 }
 0x229   : > { %v470_v28 = vadd.f32 %v608_v23, %v469_v26  ;;  %v675_v29 = vpop.f32.mrb[3].mxu1 }
 0x22b   : > { %v631_v30 = vpack.c.bf16 %v470_v28, %v467_v27 }
 0x22d   : > { %632 = vst [vmem:[%s271_s10] sm:$0xff] %v631_v30  }
 0x22e   : > { %860 = shalt.err (!%p857_p1)
}
 0x22f   : > { %s861_s12 = scalar_lea.hbm %s1168_s11, 128  ;;  %s865_s15 = scalar_lea.hbm %s1217_s5, 256 }
 0x230   : > { %p862_p13 = scmp.ne.s32.totalorder %s1168_s11, %s861_s12  ;;  %p866_p4 = scmp.lt.u32.totalorder %s1168_s11, %s1217_s5 }
 0x231   : > { %p867_p5 = scmp.lt.u32.totalorder %s865_s15, %s861_s12  ;;  %p869_p11 = scmp.lt.u32.totalorder %s861_s12, %s1168_s11 }
 0x232   : > { %p863_p6 = pnand %p862_p13, %p1231_p0 }
 0x233   : > { %p868_p8 = por %p867_p5, %p866_p4 }
 0x234   : > { %p864_p10 = pneg %p863_p6 }
 0x235   : > { %p870_p2 = por %p869_p11, %p868_p8 }
 0x237   : > { %p871_p3 = pnand %p870_p2, %p864_p10 }
 0x239   : > { %874 = shalt.err (!%p871_p3)
}
 0x23a   : > { %s927_s13 = smov 64   ;;  %s928_s9 = smov 4  }
 0x23b   : > { %686 = dma.vmem_to_hbm [thread:$0]  (%p1231_p0), %s1163_s28, 128, %s1168_s11, %s484_s17, %s927_s13, %s927_s13, %s928_s9  }
 0x23c PF: > { %s512_s30 = sand.u32 1, %s905_s18   ;;  %p1232_p7 = scmp.ne.s32.totalorder %s1222_s25, 0 }
 0x23d   : > { %p1233_p9 = scmp.ge.s32.totalorder %s917_s21, 2  ;;  %s513_s7 = scalar_lea.sflag [#allocation4], %s512_s30 }
 0x23f   : > { %p700_p12 = pnand %p1233_p9, %p1232_p7 }
 0x241   : > { %900 = dma.done.wait (!%p700_p12), %s513_s7, 128  }
 0x242   : > { %902 = vsyncadd (!%p700_p12), %s513_s7, 4294967168  ;;  %p19_p1 = scmp.ge.s32.totalorder %s1075_s29, 4   ;;  %s1234_s18 = smov %s909_s19 }
 0x243   : > { %s1235_s19 = smov %s913_s20  ;;  %s1236_s20 = smov %s1091_s27 }
 0x244   : > { %s1237_s21 = smov %s1075_s29  ;;  %21 = sbr.rel (!%p19_p1) target bundleno = 6 (0x6), region = 93 }
 0x24b   :  { %518 = vsyncpa [#allocation3], 1 }
 0x24c   :  { %520 = vsyncpa [#allocation3 + $0x1], 1 }
 0x24d   :  { %521 = vsyncpa [#allocation6], 1 }
 0x24e   :  { %522 = vsyncpa [#allocation4], 1 }
 0x24f   :  { %524 = vsyncpa [#allocation4 + $0x1], 1 }

</bundles_post_ra>
